<compile_context>
chip_gen: v7x
topology: tpu7x:2x2x1
jax: 0.10.0
libtpu: 0.0.40
codegen_flags: <defaults>
</compile_context>

<pallas_src>
import numpy as np
import jax
import jax.numpy as jnp
from jax.experimental import pallas as pl
from jax.experimental.pallas import tpu as pltpu


def _round_up(x, m):
    return ((x + m - 1) // m) * m


# ---------------------------------------------------------------------------
# Pallas kernels
# ---------------------------------------------------------------------------
def _trig_halves(ids, sel):
    # freqs over the D/2 unique frequencies only (halves transcendental work).
    freqs = jnp.dot(ids, sel, preferred_element_type=jnp.float32)   # (tm, Dh)
    return jnp.cos(freqs), jnp.sin(freqs)


def _rope_kernel_split(ids_ref, sel_ref, exp_ref, cos_ref, sin_ref):
    # D % 128 == 0: two separate lane-dense (tm, D) outputs.
    cos_h, sin_h = _trig_halves(ids_ref[...], sel_ref[...])
    exp = exp_ref[...]
    cos_ref[...] = jnp.dot(cos_h, exp, preferred_element_type=jnp.float32)
    sin_ref[...] = jnp.dot(sin_h, exp, preferred_element_type=jnp.float32)


def _rope_kernel_fused(ids_ref, sel_ref, ecos_ref, esin_ref, out_ref):
    # General D: one lane-dense (tm, 2*D) output laid out as [cos | sin].
    cos_h, sin_h = _trig_halves(ids_ref[...], sel_ref[...])
    out_ref[...] = (
        jnp.dot(cos_h, ecos_ref[...], preferred_element_type=jnp.float32)
        + jnp.dot(sin_h, esin_ref[...], preferred_element_type=jnp.float32))


# ---------------------------------------------------------------------------
# Parameter / glue setup (plain numpy / JAX).
# ---------------------------------------------------------------------------
def _build_tables(axes_dim, theta):
    """Builds:
      sel_half : (n_axes, D/2)  axis-selection * inverse-frequency (no repeat)
      exp      : (D/2, D)       0/1 repeat_interleave(2) expansion
      ecos     : (D/2, 2*D)     [exp | 0]   (writes cos into first D cols)
      esin     : (D/2, 2*D)     [0 | exp]   (writes sin into last D cols)
    repeat_interleave commutes with the per-axis concatenation, so one global
    interleave expansion over D/2 -> D is exact."""
    n_axes = len(axes_dim)
    D = int(sum(axes_dim))
    Dh = D // 2
    sel = np.zeros((n_axes, Dh), dtype=np.float64)
    col = 0
    for i, d in enumerate(axes_dim):
        assert d % 2 == 0
        half = d // 2
        # torch: 1 / theta ** (arange(0, d, 2)[:d//2] / d), computed in f64.
        inv_freq = 1.0 / (float(theta) **
                          (np.arange(0, d, 2, dtype=np.float64)[:half] / d))
        sel[i, col:col + half] = inv_freq
        col += half
    exp = np.zeros((Dh, D), dtype=np.float32)
    j = np.arange(Dh)
    exp[j, 2 * j] = 1.0
    exp[j, 2 * j + 1] = 1.0
    ecos = np.concatenate([exp, np.zeros_like(exp)], axis=1)   # (Dh, 2D)
    esin = np.concatenate([np.zeros_like(exp), exp], axis=1)   # (Dh, 2D)
    return (jnp.asarray(sel, jnp.float32), jnp.asarray(exp, jnp.float32),
            jnp.asarray(ecos, jnp.float32), jnp.asarray(esin, jnp.float32))


class FluxPosEmbedPallas:
    def __init__(self, theta, axes_dim, tile_m=512):
        self.theta = theta
        self.axes_dim = list(axes_dim)
        self.total_dim = int(sum(axes_dim))
        assert self.total_dim % 2 == 0
        self.tile_m = int(tile_m)
        self.sel, self.exp, self.ecos, self.esin = _build_tables(
            self.axes_dim, self.theta)

    def __call__(self, ids):
        ids = jnp.asarray(ids).astype(jnp.float32)
        S, n_axes = ids.shape
        assert n_axes == len(self.axes_dim)
        D = self.total_dim
        Dh = D // 2

        # Tile choice: as large as tile_m, but aim for >=2 grid steps so v7x
        # megacore can shard the "parallel" axis; round to sublane multiple.
        if S >= 16:
            tm = min(self.tile_m, _round_up(pl.cdiv(S, 2), 8))
        else:
            tm = _round_up(max(S, 1), 8)
        tm = max(8, tm)
        S_pad = _round_up(S, tm)
        if S_pad != S:
            # pad with position 0 (cos=1, sin=0); sliced off below.
            ids = jnp.pad(ids, ((0, S_pad - S), (0, 0)))
        grid = (S_pad // tm,)

        cost = pl.CostEstimate(
            flops=2 * S_pad * Dh * (n_axes + 2 * D),
            transcendentals=S_pad * D,
            bytes_accessed=4 * (S_pad * n_axes + 2 * S_pad * D
                                + n_axes * Dh + 2 * Dh * D),
        )
        cparams = pltpu.CompilerParams(dimension_semantics=("parallel",))

        ids_spec = pl.BlockSpec((tm, n_axes), lambda i: (i, 0))
        sel_spec = pl.BlockSpec((n_axes, Dh), lambda i: (0, 0))

        if D % 128 == 0:
            # Already lane-dense: two separate (S, D) outputs.
            exp_spec = pl.BlockSpec((Dh, D), lambda i: (0, 0))
            out_spec = pl.BlockSpec((tm, D), lambda i: (i, 0))
            cos, sin = pl.pallas_call(
                _rope_kernel_split,
                out_shape=(jax.ShapeDtypeStruct((S_pad, D), jnp.float32),
                           jax.ShapeDtypeStruct((S_pad, D), jnp.float32)),
                grid_spec=pltpu.PrefetchScalarGridSpec(
                    num_scalar_prefetch=0,
                    grid=grid,
                    in_specs=[ids_spec, sel_spec, exp_spec],
                    out_specs=[out_spec, out_spec],
                ),
                compiler_params=cparams,
                cost_estimate=cost,
            )(ids, self.sel, self.exp)
        else:
            # General case (e.g. D=64): single fused lane-dense (S, 2*D) slab.
            e_spec = pl.BlockSpec((Dh, 2 * D), lambda i: (0, 0))
            out_spec = pl.BlockSpec((tm, 2 * D), lambda i: (i, 0))
            out = pl.pallas_call(
                _rope_kernel_fused,
                out_shape=jax.ShapeDtypeStruct((S_pad, 2 * D), jnp.float32),
                grid_spec=pltpu.PrefetchScalarGridSpec(
                    num_scalar_prefetch=0,
                    grid=grid,
                    in_specs=[ids_spec, sel_spec, e_spec, e_spec],
                    out_specs=out_spec,
                ),
                compiler_params=cparams,
                cost_estimate=cost,
            )(ids, self.sel, self.ecos, self.esin)
            cos, sin = out[:, :D], out[:, D:]

        if S_pad != S:
            cos, sin = cos[:S], sin[:S]
        return cos, sin


# ---------------------------------------------------------------------------
# Pure-JAX reference (mirrors the PyTorch forward, in float32).
# ---------------------------------------------------------------------------
def _ref_forward(ids, axes_dim, theta):
    pos = ids.astype(jnp.float32)
    cos_out, sin_out = [], []
    for i, d in enumerate(axes_dim):
        half = d // 2
        inv_freq = 1.0 / (theta ** (jnp.arange(0, d, 2,
                                                dtype=jnp.float32)[:half] / d))
        freqs = jnp.outer(pos[:, i], inv_freq)          # (S, d/2)
        cos_out.append(jnp.repeat(jnp.cos(freqs), 2, axis=1))
        sin_out.append(jnp.repeat(jnp.sin(freqs), 2, axis=1))
    return jnp.concatenate(cos_out, -1), jnp.concatenate(sin_out, -1)


if __name__ == "__main__":
    theta = 10000
    key = jax.random.PRNGKey(0)
    k1, k2 = jax.random.split(key)

    # Case 1: D = 64 -> fused lane-dense (S, 2D=128) output path.
    axes_dim = [16, 24, 24]
    seq = 16
    ids = jax.random.randint(k1, (seq, len(axes_dim)), 0, 64).astype(jnp.float32)
    emb = FluxPosEmbedPallas(theta=theta, axes_dim=axes_dim, tile_m=512)
    cos, sin = emb(ids)
    cos = jax.block_until_ready(cos)
    sin = jax.block_until_ready(sin)
    cos_ref, sin_ref = _ref_forward(ids, axes_dim, float(theta))
    assert cos.shape == (seq, sum(axes_dim)) and sin.shape == (seq, sum(axes_dim))
    np.testing.assert_allclose(np.asarray(cos), np.asarray(cos_ref),
                               rtol=1e-5, atol=1e-5)
    np.testing.assert_allclose(np.asarray(sin), np.asarray(sin_ref),
                               rtol=1e-5, atol=1e-5)

    # Case 2: real Flux dims (D = 128 -> split lane-dense path) with a ragged
    # sequence length, exercising the pad-and-slice tail handling.
    axes_dim2 = [16, 56, 56]
    seq2 = 37
    ids2 = jax.random.randint(k2, (seq2, len(axes_dim2)), 0, 64).astype(jnp.float32)
    emb2 = FluxPosEmbedPallas(theta=theta, axes_dim=axes_dim2, tile_m=512)
    cos2, sin2 = emb2(ids2)
    cos2 = jax.block_until_ready(cos2)
    sin2 = jax.block_until_ready(sin2)
    cos2_ref, sin2_ref = _ref_forward(ids2, axes_dim2, float(theta))
    assert cos2.shape == (seq2, sum(axes_dim2))
    np.testing.assert_allclose(np.asarray(cos2), np.asarray(cos2_ref),
                               rtol=1e-5, atol=1e-5)
    np.testing.assert_allclose(np.asarray(sin2), np.asarray(sin2_ref),
                               rtol=1e-5, atol=1e-5)

    print("KERNEL_OK")
</pallas_src>

<mosaic_0001>
module attributes {stable_mosaic.version = 11 : i64} {
  func.func @_rope_kernel_fused(%arg0: i32, %arg1: memref<8x3xf32, #tpu.memory_space<vmem>>, %arg2: memref<3x32xf32, #tpu.memory_space<vmem>>, %arg3: memref<32x128xf32, #tpu.memory_space<vmem>>, %arg4: memref<32x128xf32, #tpu.memory_space<vmem>>, %arg5: memref<8x128xf32, #tpu.memory_space<vmem>>) attributes {dimension_semantics = [#tpu.dimension_semantics<parallel>], iteration_bounds = array<i64: 2>, scalar_prefetch = 0 : i64, scratch_operands = 0 : i64, tpu.core_type = #tpu.core_type<tc>, window_params = [{transform_indices = @transform_0, window_bounds = array<i64: 8, 3>}, {pipeline_mode = #tpu.pipeline_mode<synchronous>, transform_indices = @transform_1, window_bounds = array<i64: 3, 32>}, {pipeline_mode = #tpu.pipeline_mode<synchronous>, transform_indices = @transform_2, window_bounds = array<i64: 32, 128>}, {pipeline_mode = #tpu.pipeline_mode<synchronous>, transform_indices = @transform_3, window_bounds = array<i64: 32, 128>}, {transform_indices = @transform_4, window_bounds = array<i64: 8, 128>}]} {
    %c0 = arith.constant 0 : index
    %c0_0 = arith.constant 0 : index
    %0 = vector.load %arg1[%c0, %c0_0] : memref<8x3xf32, #tpu.memory_space<vmem>>, vector<8x3xf32>
    %c0_1 = arith.constant 0 : index
    %c0_2 = arith.constant 0 : index
    %1 = vector.load %arg2[%c0_1, %c0_2] : memref<3x32xf32, #tpu.memory_space<vmem>>, vector<3x32xf32>
    %cst = arith.constant dense<0.000000e+00> : vector<8x32xf32>
    %2 = tpu.matmul %0, %1, %cst {dimension_numbers = #tpu.dot_dimension_numbers<[1], [0], [0], [1], [0, 0, 1, 1], [], []>} : vector<8x3xf32>, vector<3x32xf32>, vector<8x32xf32> -> vector<8x32xf32>
    %3 = math.cos %2 : vector<8x32xf32>
    %4 = math.sin %2 : vector<8x32xf32>
    %c0_3 = arith.constant 0 : index
    %c0_4 = arith.constant 0 : index
    %5 = vector.load %arg3[%c0_3, %c0_4] : memref<32x128xf32, #tpu.memory_space<vmem>>, vector<32x128xf32>
    %cst_5 = arith.constant dense<0.000000e+00> : vector<8x128xf32>
    %6 = tpu.matmul %3, %5, %cst_5 {dimension_numbers = #tpu.dot_dimension_numbers<[1], [0], [0], [1], [0, 0, 1, 1], [], []>} : vector<8x32xf32>, vector<32x128xf32>, vector<8x128xf32> -> vector<8x128xf32>
    %c0_6 = arith.constant 0 : index
    %c0_7 = arith.constant 0 : index
    %7 = vector.load %arg4[%c0_6, %c0_7] : memref<32x128xf32, #tpu.memory_space<vmem>>, vector<32x128xf32>
    %cst_8 = arith.constant dense<0.000000e+00> : vector<8x128xf32>
    %8 = tpu.matmul %4, %7, %cst_8 {dimension_numbers = #tpu.dot_dimension_numbers<[1], [0], [0], [1], [0, 0, 1, 1], [], []>} : vector<8x32xf32>, vector<32x128xf32>, vector<8x128xf32> -> vector<8x128xf32>
    %9 = arith.addf %6, %8 : vector<8x128xf32>
    %c0_9 = arith.constant 0 : index
    %c0_10 = arith.constant 0 : index
    %10 = vector.load %arg5[%c0_9, %c0_10] : memref<8x128xf32, #tpu.memory_space<vmem>>, vector<8x128xf32>
    tpu.vector_store %arg5[%c0_9, %c0_10], %9 {strides = array<i32>} : memref<8x128xf32, #tpu.memory_space<vmem>>, vector<8x128xf32>,
    return
  }
  func.func @transform_0(%arg0: i32) -> (i32, i32) {
    %c0_i32 = arith.constant 0 : i32
    %c0_i32_0 = arith.constant 0 : i32
    return %arg0, %c0_i32 : i32, i32
  }
  func.func @transform_1(%arg0: i32) -> (i32, i32) {
    %c0_i32 = arith.constant 0 : i32
    %c0_i32_0 = arith.constant 0 : i32
    %c0_i32_1 = arith.constant 0 : i32
    return %c0_i32, %c0_i32_0 : i32, i32
  }
  func.func @transform_2(%arg0: i32) -> (i32, i32) {
    %c0_i32 = arith.constant 0 : i32
    %c0_i32_0 = arith.constant 0 : i32
    %c0_i32_1 = arith.constant 0 : i32
    return %c0_i32, %c0_i32_0 : i32, i32
  }
  func.func @transform_3(%arg0: i32) -> (i32, i32) {
    %c0_i32 = arith.constant 0 : i32
    %c0_i32_0 = arith.constant 0 : i32
    %c0_i32_1 = arith.constant 0 : i32
    return %c0_i32, %c0_i32_0 : i32, i32
  }
  func.func @transform_4(%arg0: i32) -> (i32, i32) {
    %c0_i32 = arith.constant 0 : i32
    %c0_i32_0 = arith.constant 0 : i32
    return %arg0, %c0_i32 : i32, i32
  }
}

</mosaic_0001>

<bundles_post_ra>
// kernel: tpu_custom_call.1
= control target key start
LH: loop header
LB: loop body
LE: loop exit
PB: predicated region body
PF: predicated region fallthrough
CT: control target
= control target key end

     0   :  { %9 = vsyncpa [#allocation3], 0  ;;  %s1283_s0 = inlined_call_operand.vmem [shape: f32[16,3], index: 0, kind: input, shape index: {}]   ;;  %s1284_s1 = inlined_call_operand.vmem [shape: f32[3,32], index: 1, kind: input, shape index: {}]   ;;  %s1285_s2 = inlined_call_operand.hbm [shape: f32[32,128], index: 2, kind: input, shape index: {}]   ;;  %s1286_s3 = inlined_call_operand.hbm [shape: f32[32,128], index: 3, kind: input, shape index: {}]   ;;  %s1287_s4 = inlined_call_operand.hbm [shape: f32[16,128], index: 4, kind: output, shape index: {}]  }
   0x1   :  { %10 = vsyncpa [#allocation6], 0 }
   0x2   :  { %11 = vsyncpa [#allocation4], 0 }
   0x3   :  { %13 = vsyncpa [#allocation4 + $0x1], 0  ;;  %s1085_s15 = smov 0   ;;  %s1087_s16 = smov 0  }
   0x4   :  { %s1089_s17 = smov 0   ;;  %s1091_s18 = smov 0  }
   0x5 LB: > { %s1106_s19 = sadd.s32 4294967295, %s1044_s18   ;;  %s761_s20 = sadd.s32 4294967294, %s1044_s18   ;;  %s1044_s18 = sphi %s1091_s18, %s1305_s18   ;;  %s1040_s17 = sphi %s1089_s17, %s1304_s17   ;;  %s1036_s16 = sphi %s1087_s16, %s1303_s16   ;;  %s1032_s15 = sphi %s1085_s15, %s1302_s15  }
   0x6   : > { %s1110_s21 = sadd.s32 1, %s1044_s18   ;;  %s115_s22 = sadd.s32 1, %s1040_s17 }
   0x7   : > { %s112_s23 = ssub.s32 %s1044_s18, %s1110_s21  ;;  %p125_p0 = scmp.ne.s32.totalorder %s1040_s17, %s1036_s16 }
   0x8   : > { %p113_p1 = scmp.eq.s32.totalorder %s112_s23, 0  ;;  %p126_p2 = scmp.eq.s32.totalorder %s1106_s19, 1 }
   0x9   : > { %p131_p3 = scmp.ne.s32.totalorder %s1036_s16, %s1032_s15  ;;  %p132_p4 = scmp.eq.s32.totalorder %s761_s20, 1 }
   0xa   : > { %s1121_s24 = scalar_select %p113_p1, %s1040_s17, %s115_s22  }
   0xb   : > { %p1123_p5 = por %p126_p2, %p125_p0  ;;  %p1127_p6 = por %p132_p4, %p131_p3 }
   0xc   : > { %p762_p7 = scmp.ge.s32.totalorder %s1044_s18, 1  ;;  %p139_p8 = scmp.lt.s32.totalorder %s1044_s18, 3 }
   0xd   : > { %s1291_s25 = scalar_select %p1123_p5, 1, 0 }
   0xe   : > { %s1292_s26 = scalar_select %p1127_p6, 1, 0 }
   0xf   : > { %p1288_p9 = scmp.eq.s32.totalorder %s1106_s19, 0  ;;  %p1134_p10 = pnand %p762_p7, %p139_p8 }
  0x10   : > { %s1046_s28 = smov [#allocation2]   ;;  %s1047_s5 = smov [#allocation5]  }
  0x11   : > { %s1293_s27 = scalar_select %p1134_p10, 1, 0 }
  0x12   : > { %s154_s29 = sshll.u32 %s1046_s28, 4  ;;  %p853_p11 = pneg %p1134_p10  ;;  %s155_s29 = int_to_ptr.vmem [resolvable:$true] %s154_s29 }
  0x13   : > { %s167_s6 = sshll.u32 %s1047_s5, 4  ;;  %s918_s9 = scalar_lea.hbm %s1285_s2, 512  ;;  %s1146_s6 = int_to_ptr.vmem [resolvable:$true] %s167_s6 }
  0x14   : > { %p1142_p12 = pnand %p1288_p9, %p853_p11  ;;  %p919_p13 = scmp.ne.s32.totalorder %s1285_s2, %s918_s9 }
  0x15   : > { %p925_p3 = scmp.lt.u32.totalorder %s918_s9, %s1285_s2 }
  0x16   : > { %p920_p0 = pneg %p1142_p12 }
  0x18   : > { %p921_p1 = pnand %p920_p0, %p919_p13 }
  0x1a   : > { %p922_p2 = pneg %p921_p1 }
  0x1c   : > { %p927_p4 = pnand %p925_p3, %p922_p2 }
  0x1e   : > { %930 = shalt.err (!%p927_p4)
}
  0x1f   : > { %s931_s14 = scalar_lea.vmem %s155_s29, 512  ;;  %p939_p9 = scmp.lt.s32.totalorder %s155_s29, %s155_s29 }
  0x20   : > { %p932_p7 = scmp.ne.s32.totalorder %s155_s29, %s931_s14  ;;  %p940_p6 = scmp.lt.s32.totalorder %s931_s14, %s931_s14 }
  0x22   : > { %p934_p8 = pnand %p932_p7, %p920_p0  ;;  %p941_p5 = por %p940_p6, %p939_p9 }
  0x24   : > { %p935_p11 = pneg %p934_p8 }
  0x26   : > { %p942_p10 = pnand %p941_p5, %p935_p11 }
  0x28   : > { %945 = shalt.err (!%p942_p10)
}
  0x29   : > { %s1048_s20 = smov 128   ;;  %s1049_s22 = smov 8  }
  0x2a   : > { %856 = dma.hbm_to_vmem [thread:$0]  (!%p1142_p12), %s1285_s2, 512, %s155_s29, [#allocation3], %s1048_s20, %s1048_s20, %s1049_s22  }
  0x2b   : > { %s946_s8 = scalar_lea.hbm %s1286_s3, 512 }
  0x2c   : > { %p947_p13 = scmp.ne.s32.totalorder %s1286_s3, %s946_s8  ;;  %p953_p9 = scmp.lt.u32.totalorder %s946_s8, %s1286_s3 }
  0x2e   : > { %p949_p5 = pnand %p947_p13, %p920_p0 }
  0x30   : > { %p950_p6 = pneg %p949_p5 }
  0x32   : > { %p955_p10 = pnand %p953_p9, %p950_p6 }
  0x34   : > { %958 = shalt.err (!%p955_p10)
}
  0x35   : > { %s959_s29 = scalar_lea.vmem %s1146_s6, 512  ;;  %p967_p4 = scmp.lt.s32.totalorder %s1146_s6, %s1146_s6 }
  0x36   : > { %p960_p1 = scmp.ne.s32.totalorder %s1146_s6, %s959_s29  ;;  %p968_p7 = scmp.lt.s32.totalorder %s959_s29, %s959_s29 }
  0x38   : > { %p962_p2 = pnand %p960_p1, %p920_p0  ;;  %p969_p8 = por %p968_p7, %p967_p4 }
  0x3a   : > { %p963_p3 = pneg %p962_p2 }
  0x3c   : > { %p970_p11 = pnand %p969_p8, %p963_p3 }
  0x3e   : > { %973 = shalt.err (!%p970_p11)
}
  0x3f   : > { %859 = dma.hbm_to_vmem [thread:$0]  (!%p1142_p12), %s1286_s3, 512, %s1146_s6, [#allocation6], %s1048_s20, %s1048_s20, %s1049_s22  }
  0x40   : > { %p1295_p13 = scmp.ne.s32.totalorder %s1293_s27, 0 }
  0x41   : > { %p1296_p5 = scmp.eq.s32.totalorder (!%p1295_p13), %s1106_s19, 0 }
  0x42   : > { %190 = sbr.rel (%p1295_p13) target bundleno = 604 (0x25c), region = 36 }
  0x49   : > { %1019 = dma.done.wait (%p1296_p5), [#allocation3], 512   ;;  %p1297_p0 = pmov %p1296_p5 }
  0x4b   : > { %1021 = vsyncadd (%p1297_p0), [#allocation3], 4294966784  ;;  %p1298_p6 = pmov %p1297_p0 }
  0x4c   : > { %p1299_p9 = pmov %p1297_p0 }
  0x4d   : > { %1023 = dma.done.wait (%p1298_p6), [#allocation6], 512  }
  0x4e   : > { %1025 = vsyncadd (%p1299_p9), [#allocation6], 4294966784  ;;  %p219_p10 = scmp.lt.s32.totalorder %s1106_s19, 1  ;;  %v1050_v0 = vmov 0.0   ;;  %vm1051_vm0 = vmmov 0   ;;  %vm229_vm1 = vcmask 1042432  }
  0x4f   : > { %799 = vmatprep.subr.mxu0 %v1050_v0  ;;  %801 = vmatprep.mubr.msk.f32.mxu0 %vm1051_vm0, %v1050_v0  ;;  %vm225_vm2 = vcmask 23552   ;;  %v224_v1 = vld [vmem:[%s1284_s1] sm:$0x7]  ;;  %v514_v3 = vld [vmem:[#allocation5] sm:$0xff]  ;;  %v515_v4 = vld [vmem:[#allocation5 + $0x8] sm:$0xff]  ;;  %v1052_v6 = vmov 0.0|0.0  }
  0x50   : > { %s220_s27 = scalar_select %p219_p10, %s1106_s19, 1  ;;  %823 = vmatprep.mubr.msk.f32.mxu1 %vm1051_vm0, %v1050_v0  ;;  %800 = vmatpush3.msk.msra.mxu0 %vm229_vm1, %v224_v1  ;;  %v510_v5 = vld [vmem:[#allocation2] sm:$0xff]  ;;  %v827_v7 = vpack.c.bf16 %v515_v4, %v514_v3  ;;  %v511_v8 = vld [vmem:[#allocation2 + $0x8] sm:$0xff]  ;;  %v516_v9 = vld [vmem:[#allocation5 + $0x10] sm:$0xff]  ;;  %v1053_v28 = vmov 683565275  }
  0x51   : > { %826 = vmatprep.subr.bf16.mxu0 %v1052_v6  ;;  %832 = vmatprep.subr.bf16.mxu1 %v1052_v6  ;;  %v517_v10 = vld [vmem:[#allocation5 + $0x18] sm:$0xff]  ;;  %v833_v11 = vpack.c.bf16 %v511_v8, %v510_v5  ;;  %v512_v12 = vld [vmem:[#allocation2 + $0x10] sm:$0xff]  ;;  %v1054_v30 = vmov 2475754826   ;;  %v1055_v33 = vmov 2131351028  }
  0x52   : > { %s770_s30 = sshll.u32 %s220_s27, 3  ;;  %v513_v13 = vld [vmem:[#allocation2 + $0x18] sm:$0xff]  ;;  %v830_v14 = vpack.c.bf16 %v517_v10, %v516_v9  ;;  %v1056_v36 = vmov 2102212464   ;;  %v1057_v39 = vmov 920167782  }
  0x53   : > { %s222_s22 = scalar_lea.vmem %s1283_s0, %s770_s30  ;;  %834 = vmatpush3.bf16.msra.mxu1 %v833_v11  ;;  %v836_v15 = vpack.c.bf16 %v513_v13, %v512_v12  ;;  %v1058_v42 = vmov 1326507024   ;;  %vm518_vm13 = vcmask 261120   ;;  %s216_s5 = sand.u32 1, %s1036_s16  }
  0x54   : > { %v223_v2 = vld [vmem:[%s222_s22] sm:$0xff]  ;;  %835 = vmatprep.subr.bf16.mxu1 %v1052_v6  ;;  %s769_s7 = sshll.u32 %s216_s5, 3  ;;  %s784_s8 = sshll.u32 %s1106_s19, 7 }
  0x55   : > { %802 = vmatmul.mubr.msk.f32.vlgmr.msra.gmra.mrb[0].mxu0 %vm225_vm2, %v223_v2  ;;  %s218_s9 = scalar_lea.vmem [#allocation7], %s769_s7  ;;  %s1241_s29 = scalar_lea.hbm %s1287_s4, %s784_s8 }
  0x56   : > { %812 = vmatprep.mubr.msk.f32.mxu0 %vm1051_vm0, %v1050_v0  ;;  %828 = vmatpush3.bf16.msra.mxu0 %v827_v7  ;;  %s680_s10 = sshll.u32 %s218_s9, 4  ;;  %s667_s13 = scalar_lea.sflag [#allocation4], %s216_s5  ;;  %s1243_s10 = int_to_ptr.vmem [resolvable:$true] %s680_s10 }
  0x57   : > { %829 = vmatprep.subr.bf16.mxu0 %v1052_v6  ;;  %837 = vmatpush3.bf16.msra.mxu1 %v836_v15  ;;  %s974_s19 = scalar_lea.vmem %s1243_s10, 128  ;;  %p1300_p1 = scmp.ne.s32.totalorder %s1291_s25, 0 }
  0x58   : > { %p975_p12 = scmp.ne.s32.totalorder %s1243_s10, %s974_s19  ;;  %s1059_s14 = smov [#allocation7]  }
  0x59   : > { %s978_s27 = sshll.u32 %s1059_s14, 4  ;;  %s979_s27 = int_to_ptr.vmem [resolvable:$false] %s978_s27 }
  0x5a   : > { %831 = vmatpush3.bf16.msra.mxu0 %v830_v14  ;;  %p976_p2 = pnand %p975_p12, %p1300_p1  ;;  %s980_s30 = scalar_lea.vmem %s979_s27, 256 }
  0x5b   : > { %p981_p4 = scmp.lt.s32.totalorder %s1243_s10, %s979_s27  ;;  %p982_p7 = scmp.lt.s32.totalorder %s980_s30, %s974_s19 }
  0x5c   : > { %p977_p3 = pneg %p976_p2 }
  0x5d   : > { %p983_p8 = por %p982_p7, %p981_p4 }
  0x5f   : > { %p984_p11 = pnand %p983_p8, %p977_p3 }
 0x128   : > { %v1213_v16 = vpop.f32.mrb[0].mxu0 }
 0x129   : > { %v306_v17 = vand.u32 2139095040, %v1213_v16  ;;  %v803_v18 = vpop.f32.mrb[1].mxu0  ;;  %v303_v22 = vand.u32 2147483647, %v1213_v16  ;;  %vm305_vm10 = vcmp.lt.s32.totalorder %v1213_v16, 0 }
 0x12b   : > { %v307_v19 = vshrl.u32 %v306_v17, 23  ;;  %v310_v25 = vand.u32 8388607, %v303_v22  ;;  %vm304_vm11 = vcmp.le.f32.partialorder %v303_v22, 0.7853982 }
 0x12d   : > { %v773_v20 = vadd.s32 4294967169, %v307_v19  ;;  %v311_v44 = vor.u32 8388608, %v310_v25 }
 0x12f   : > { %v313_v21 = vadd.s32 1, %v773_v20  ;;  %v351_v58 = vshll.u32 %v311_v44, 8 }
 0x131   : > { %vm314_vm3 = vcmp.gt.s32.totalorder %v313_v21, 0 }
 0x132   : > { %v315_v23 = vsel %vm314_vm3, %v313_v21, 0  ;;  %vm395_vm3 = vweird.f32 %v1213_v16 }
 0x133   : > { %v317_v24 = vand.u32 31, %v315_v23  ;;  %v316_v27 = vshrl.u32 %v315_v23, 5 }
 0x135   : > { %v318_v26 = vsub.s32 32, %v317_v24  ;;  %v320_v29 = vshll.u32 %v1053_v28, %v317_v24  ;;  %v323_v31 = vshll.u32 %v1054_v30, %v317_v24  ;;  %v326_v35 = vshll.u32 %v1055_v33, %v317_v24 }
 0x136   : > { %v329_v38 = vshll.u32 %v1056_v36, %v317_v24  ;;  %v332_v41 = vshll.u32 %v1057_v39, %v317_v24  ;;  %vm335_vm4 = vcmp.lt.s32.totalorder %v316_v27, 1  ;;  %vm338_vm5 = vcmp.lt.s32.totalorder %v316_v27, 4 }
 0x137   : > { %v321_v32 = vshrl.u32 %v1054_v30, %v318_v26  ;;  %v324_v34 = vshrl.u32 %v1055_v33, %v318_v26  ;;  %v327_v37 = vshrl.u32 %v1056_v36, %v318_v26  ;;  %v330_v40 = vshrl.u32 %v1057_v39, %v318_v26 }
 0x138   : > { %v333_v43 = vshrl.u32 %v1058_v42, %v318_v26  ;;  %v319_v53 = vshrl.u32 %v1053_v28, %v318_v26  ;;  %vm337_vm6 = vcmp.lt.s32.totalorder %v316_v27, 3  ;;  %vm336_vm7 = vcmp.lt.s32.totalorder %v316_v27, 2 }
 0x139   : > { %v322_v45 = vor.u32 %v321_v32, %v320_v29  ;;  %v325_v46 = vor.u32 %v324_v34, %v323_v31  ;;  %v328_v47 = vor.u32 %v327_v37, %v326_v35  ;;  %v331_v48 = vor.u32 %v330_v40, %v329_v38 }
 0x13a   : > { %v334_v49 = vor.u32 %v333_v43, %v332_v41 }
 0x13b   : > { %v340_v50 = vsel %vm338_vm5, %v328_v47, 2102212464  ;;  %v343_v51 = vsel %vm335_vm4, %v322_v45, %v325_v46  ;;  %v347_v52 = vsel %vm335_vm4, %v325_v46, %v328_v47  ;;  %v344_v54 = vsel %vm338_vm5, %v331_v48, 920167782 }
 0x13c   : > { %v348_v55 = vsel %vm338_vm5, %v334_v49, 1326507024  ;;  %v345_v56 = vsel %vm337_vm6, %v328_v47, %v344_v54  ;;  %v339_v59 = vsel %vm335_vm4, %v319_v53, %v322_v45  ;;  %v341_v60 = vsel %vm337_vm6, %v325_v46, %v340_v50 }
 0x13d   : > { %v349_v57 = vsel %vm337_vm6, %v331_v48, %v348_v55  ;;  %v346_v61 = vsel %vm336_vm7, %v343_v51, %v345_v56  ;;  %v342_v3 = vsel %vm336_vm7, %v339_v59, %v341_v60 }
 0x13e   : > { %v350_v62 = vsel %vm336_vm7, %v347_v52, %v349_v57  ;;  %v1222_v1 = vmul.u32.u64.low %v351_v58, %v346_v61  ;;  %v1223_v2 = vmul.u32.u64.high %v351_v58, %v346_v61, %v1222_v1  ;;  %v358_v5 = vmul.u32 %v351_v58, %v342_v3 }
 0x13f   : > { %v1219_v63 = vmul.u32.u64.low %v351_v58, %v350_v62  ;;  %v1220_v0 = vmul.u32.u64.high %v351_v58, %v350_v62, %v1219_v63 }
 0x140   : > { %v361_v4 = vadd.s32 1, %v1223_v2 }
 0x141   : > { %vm360_vm8 = vc.u32 %v1220_v0, %v1222_v1  ;;  %v359_v18 = vadd.s32 %v1222_v1, %v1220_v0 }
 0x142   : > { %v362_v6 = vsel %vm360_vm8, %v361_v4, %v1223_v2 }
 0x143   : > { %v363_v7 = vadd.s32 %v362_v6, %v358_v5 }
 0x145   : > { %v364_v8 = vadd.s32 536870912, %v363_v7 }
 0x147   : > { %v365_v9 = vshrl.u32 %v364_v8, 30 }
 0x149   : > { %v366_v10 = vshll.u32 %v365_v9, 30  ;;  %v389_v31 = vsub.s32 4, %v365_v9 }
 0x14b   : > { %v367_v11 = vsub.s32 %v363_v7, %v366_v10  ;;  %v390_v34 = vsel %vm305_vm10, %v389_v31, %v365_v9 }
 0x14c   : > { %v392_v36 = vsel %vm304_vm11, 0, %v390_v34 }
 0x14d   : > { %v369_v12 = vsub.s32 0, %v367_v11  ;;  %v499_v37 = vadd.s32 3, %v392_v36  ;;  %v396_v39 = vand.u32 3, %v392_v36 }
 0x14f   : > { %v774_v13 = vmin.u32 %v369_v12, %v367_v11  ;;  %v500_v38 = vand.u32 3, %v499_v37  ;;  %vm401_vm14 = vcmp.eq.s32.totalorder %v396_v39, 2  ;;  %vm398_vm0 = vcmp.eq.s32.totalorder %v396_v39, 0 }
 0x150   : > { %vm397_vm2 = vcmp.lt.s32.totalorder %v396_v39, 2 }
 0x151   : > { %v371_v14 = vclz %v774_v13  ;;  %vm505_vm12 = vcmp.eq.s32.totalorder %v500_v38, 2  ;;  %vm502_vm15 = vcmp.eq.s32.totalorder %v500_v38, 0  ;;  %vm501_vm1 = vcmp.lt.s32.totalorder %v500_v38, 2 }
 0x153   : > { %v775_v15 = vadd.s32 4294967294, %v371_v14 }
 0x155   : > { %vm776_vm9 = vcmp.lt.s32.totalorder %v775_v15, 0 }
 0x156   : > { %v374_v17 = vsel %vm776_vm9, 0, %v775_v15 }
 0x157   : > { %v375_v19 = vsub.s32 32, %v374_v17  ;;  %v379_v20 = vsub.s32 4294967266, %v374_v17  ;;  %v376_v21 = vshll.u32 %v367_v11, %v374_v17 }
 0x159   : > { %v377_v23 = vshrl.u32 %v359_v18, %v375_v19  ;;  %v380_v24 = vadd.s32 127, %v379_v20 }
 0x15b   : > { %v378_v25 = vor.u32 %v377_v23, %v376_v21  ;;  %v381_v26 = vshll.u32 %v380_v24, 23 }
 0x15d   : > { %v382_v27 = vor.u32 4788187, %v381_v26  ;;  %v385_v29 = vcvt.s32.f32 %v378_v25 }
 0x15f   : > { %v383_v28 = vand.u32 2147483647, %v382_v27 }
 0x161   : > { %v386_v30 = vmul.f32 %v385_v29, %v383_v28 }
 0x163   : > { %v387_v32 = vxor.u32 2147483648, %v386_v30 }
 0x165   : > { %v388_v33 = vsel %vm305_vm10, %v387_v32, %v386_v30 }
 0x166   : > { %v391_v35 = vsel %vm304_vm11, %v1213_v16, %v388_v33 }
 0x167   : > { %914 = vcosq.f32 %v391_v35 }
 0x168   : > { %916 = vsinq.f32 %v391_v35 }
 0x171   : > { %v915_v40 = vpop.eup %914 }
 0x172   : > { %v917_v41 = vpop.eup %916  ;;  %v402_v42 = vxor.u32 2147483648, %v915_v40 }
 0x173   : > { %v399_v43 = vxor.u32 2147483648, %v917_v41 }
 0x174   : > { %v507_v22 = vsel %vm505_vm12, %v402_v42, %v917_v41  ;;  %v403_v44 = vsel %vm401_vm14, %v402_v42, %v917_v41 }
 0x175   : > { %v504_v45 = vsel %vm502_vm15, %v915_v40, %v399_v43  ;;  %v400_v46 = vsel %vm398_vm0, %v915_v40, %v399_v43 }
 0x176   : > { %v508_v47 = vsel %vm501_vm1, %v504_v45, %v507_v22  ;;  %v404_v48 = vsel %vm397_vm2, %v400_v46, %v403_v44 }
 0x177   : > { %v509_v49 = vsel %vm395_vm3, nan, %v508_v47  ;;  %v405_v50 = vsel %vm395_vm3, nan, %v404_v48 }
 0x178   : > { %813 = vmatmul.mubr.msk.f32.vlgmr.msra.gmra.mrb[2].mxu0 %vm518_vm13, %v509_v49  ;;  %824 = vmatmul.mubr.msk.f32.vlgmr.msra.gmra.mrb[0].mxu1 %vm518_vm13, %v405_v50 }
 0x24b   : > { %v588_v51 = vpop.f32.mrb[2].mxu0  ;;  %v661_v52 = vpop.f32.mrb[0].mxu1 }
 0x24c   : > { %v662_v53 = vadd.f32 %v661_v52, %v588_v51  ;;  %v814_v54 = vpop.f32.mrb[3].mxu0  ;;  %v825_v55 = vpop.f32.mrb[1].mxu1 }
 0x24e   : > { %665 = vst [vmem:[%s218_s9] sm:$0xff] %v662_v53 }
 0x24f   : > { %987 = shalt.err (!%p984_p11)
}
 0x250   : > { %s988_s6 = scalar_lea.hbm %s1241_s29, 128  ;;  %s992_s23 = scalar_lea.hbm %s1287_s4, 256 }
 0x251   : > { %p989_p13 = scmp.ne.s32.totalorder %s1241_s29, %s988_s6  ;;  %p993_p6 = scmp.lt.u32.totalorder %s1241_s29, %s1287_s4 }
 0x252   : > { %p994_p9 = scmp.lt.u32.totalorder %s992_s23, %s988_s6  ;;  %p996_p12 = scmp.lt.u32.totalorder %s988_s6, %s1241_s29 }
 0x253   : > { %p990_p5 = pnand %p989_p13, %p1300_p1 }
 0x254   : > { %p995_p10 = por %p994_p9, %p993_p6 }
 0x255   : > { %p991_p0 = pneg %p990_p5 }
 0x256   : > { %p997_p2 = por %p996_p12, %p995_p10 }
 0x258   : > { %p998_p3 = pnand %p997_p2, %p991_p0 }
 0x25a   : > { %1001 = shalt.err (!%p998_p3)
}
 0x25b   : > { %851 = dma.vmem_to_hbm [thread:$0]  (%p1300_p1), %s1243_s10, 128, %s1241_s29, %s667_s13  }
 0x25c PF: > { %p868_p4 = scmp.ge.s32.totalorder %s1044_s18, 2  ;;  %s692_s7 = sand.u32 1, %s1032_s15  }
 0x25d   : > { %p1301_p7 = scmp.ne.s32.totalorder %s1292_s26, 0  ;;  %s693_s8 = scalar_lea.sflag [#allocation4], %s692_s7 }
 0x25f   : > { %p861_p8 = pnand %p868_p4, %p1301_p7 }
 0x261   : > { %1027 = dma.done.wait (!%p861_p8), %s693_s8, 128  }
 0x262   : > { %1029 = vsyncadd (!%p861_p8), %s693_s8, 4294967168  ;;  %p16_p11 = scmp.ge.s32.totalorder %s1110_s21, 4   ;;  %s1302_s15 = smov %s1036_s16 }
 0x263   : > { %s1303_s16 = smov %s1040_s17  ;;  %s1304_s17 = smov %s1121_s24 }
 0x264   : > { %s1305_s18 = smov %s1110_s21  ;;  %18 = sbr.rel (!%p16_p11) target bundleno = 5 (0x5), region = 80 }
 0x26b   :  { %698 = vsyncpa [#allocation3], 1 }
 0x26c   :  { %700 = vsyncpa [#allocation3 + $0x1], 1 }
 0x26d   :  { %701 = vsyncpa [#allocation6], 1 }
 0x26e   :  { %702 = vsyncpa [#allocation4], 1 }
 0x26f   :  { %704 = vsyncpa [#allocation4 + $0x1], 1 }

</bundles_post_ra>
